<compile_context>
chip_gen: v7x
topology: tpu7x:2x2x1
jax: 0.10.0
libtpu: 0.0.40
codegen_flags: <defaults>
</compile_context>

<pallas_src>
import functools

import jax
import jax.numpy as jnp
from jax.experimental import pallas as pl
from jax.experimental.pallas import tpu as pltpu


def _round_up(x, m):
    return ((x + m - 1) // m) * m


def _darkloss_kernel(x_ref, m_ref, out_ref, xm_acc, n_acc, *,
                     tile_rows, rows, nblocks, blocks_per_core,
                     needs_block_gate, mask_rows):
    c = pl.program_id(0)   # core-slice index ("parallel")
    i = pl.program_id(1)   # block within the core slice ("arbitrary")

    @pl.when(i == 0)
    def _():
        xm_acc[...] = jnp.zeros_like(xm_acc)
        n_acc[...] = jnp.zeros_like(n_acc)

    logical_block = c * blocks_per_core + i

    def accumulate():
        x = x_ref[...].astype(jnp.float32)
        m = m_ref[...].astype(jnp.float32)
        xm = x * m
        if mask_rows:
            # Last block may extend past `rows`; those rows contain garbage.
            row_ids = jax.lax.broadcasted_iota(jnp.int32, (tile_rows, 128), 0)
            valid = (logical_block * tile_rows + row_ids) < rows
            m = jnp.where(valid, m, 0.0)
            xm = jnp.where(valid, xm, 0.0)
        # Fold the (tile_rows, 128) block down to one vreg (8, 128): pure VPU adds.
        xm_acc[...] += xm.reshape(tile_rows // 8, 8, 128).sum(axis=0)
        n_acc[...] += m.reshape(tile_rows // 8, 8, 128).sum(axis=0)

    if needs_block_gate:
        # Some (c, i) pairs map past the last real block (index_map clamps them);
        # skip their contribution entirely.
        pl.when(logical_block < nblocks)(accumulate)
    else:
        accumulate()

    @pl.when(i == pl.num_programs(1) - 1)
    def _():
        loss_p = -jnp.sum(xm_acc[...])        # partial sum(-x * mask)
        n_p = jnp.sum(n_acc[...])             # partial sum(mask)
        # Lane-dense (8,128) output block: row 0 carries the loss partial,
        # row 1 carries the mask-count partial.
        row = jax.lax.broadcasted_iota(jnp.int32, (8, 128), 0)
        out_ref[...] = jnp.where(row == 0, loss_p,
                                 jnp.where(row == 1, n_p, jnp.float32(0.0)))


def dark_loss(x, mask, dark_loss_weight=1.0, *, tile_rows=2048):
    """Computes weight * sum(-x * mask) / sum(mask) with a Pallas TPU kernel."""
    assert x.shape == mask.shape
    lanes = 128
    n = x.size

    # No dtype widening in the wrapper: x and mask travel at their native widths
    # and are cast to f32 inside the kernel (cuts HBM traffic for narrow masks).
    x_flat = jnp.ravel(x)
    m_flat = jnp.ravel(mask)
    if m_flat.dtype == jnp.bool_:
        m_flat = m_flat.astype(jnp.int8)

    # Only pad to a lane multiple when strictly necessary (zeros: no effect on sums).
    pad = (-n) % lanes
    if pad:
        x_flat = jnp.pad(x_flat, (0, pad))
        m_flat = jnp.pad(m_flat, (0, pad))
    rows = (n + pad) // lanes

    x2d = x_flat.reshape(rows, lanes)
    m2d = m_flat.reshape(rows, lanes)

    # ~1 MiB f32 blocks saturate HBM bandwidth; shrink to the array if smaller.
    tr = _round_up(max(8, min(int(tile_rows), _round_up(rows, 8))), 8)
    nblocks = pl.cdiv(rows, tr)

    num_cores = 2                       # 'parallel' axis: 2 TCs on v7x, sequential elsewhere
    bpc = pl.cdiv(nblocks, num_cores)
    needs_block_gate = (num_cores * bpc != nblocks)
    mask_rows = (rows % tr != 0)

    if needs_block_gate:
        # Clamp so the auto-generated DMA never targets a fully OOB block; the
        # kernel gates those iterations off via pl.when.
        def in_map(c, i):
            return (jnp.minimum(c * bpc + i, nblocks - 1), 0)
    else:
        def in_map(c, i):
            return (c * bpc + i, 0)

    kernel = functools.partial(
        _darkloss_kernel,
        tile_rows=tr, rows=rows, nblocks=nblocks, blocks_per_core=bpc,
        needs_block_gate=needs_block_gate, mask_rows=mask_rows)

    out = pl.pallas_call(
        kernel,
        out_shape=jax.ShapeDtypeStruct((num_cores * 8, lanes), jnp.float32),
        grid_spec=pltpu.PrefetchScalarGridSpec(
            num_scalar_prefetch=0,
            grid=(num_cores, bpc),
            in_specs=[
                pl.BlockSpec((tr, lanes), in_map),
                pl.BlockSpec((tr, lanes), in_map),
            ],
            out_specs=pl.BlockSpec((8, lanes), lambda c, i: (c, 0)),
            scratch_shapes=[
                pltpu.VMEM((8, lanes), jnp.float32),  # running sum(x * mask)
                pltpu.VMEM((8, lanes), jnp.float32),  # running sum(mask)
            ],
        ),
        compiler_params=pltpu.CompilerParams(
            dimension_semantics=("parallel", "arbitrary"),
            vmem_limit_bytes=32 * 1024 * 1024,
        ),
    )(x2d, m2d)

    parts = out.reshape(num_cores, 8, lanes)
    loss = jnp.sum(parts[:, 0, 0])
    nsum = jnp.sum(parts[:, 1, 0])
    # Matches the PyTorch module exactly (including inf/nan when sum(mask)==0).
    return jnp.float32(dark_loss_weight) * loss / nsum


if __name__ == "__main__":
    key = jax.random.PRNGKey(0)
    kx, km = jax.random.split(key)

    # Small NCHW shapes consistent with the module's forward.
    x = jax.random.normal(kx, (2, 4, 16, 16), dtype=jnp.float32)
    # Mask shipped narrow (bf16); kernel casts to f32 on the VPU.
    mask = (jax.random.uniform(km, (2, 4, 16, 16)) > 0.5).astype(jnp.bfloat16)

    weight = 1.0
    out = dark_loss(x, mask, weight)
    out = jax.block_until_ready(out)

    mask_f = mask.astype(jnp.float32)
    ref = weight * jnp.sum(-x * mask_f) / jnp.sum(mask_f)
    assert jnp.allclose(out, ref, rtol=1e-5, atol=1e-5), (out, ref)

    # Second check: awkward size exercising the lane pad, in-kernel row-tail
    # mask and the clamped/gated extra block on the second core slice.
    kx2, km2 = jax.random.split(jax.random.PRNGKey(1))
    x2 = jax.random.normal(kx2, (2, 3, 17, 16), dtype=jnp.float32)
    mask2 = (jax.random.uniform(km2, (2, 3, 17, 16)) > 0.5).astype(jnp.bfloat16)
    out2 = jax.block_until_ready(dark_loss(x2, mask2, 0.5))
    m2f = mask2.astype(jnp.float32)
    ref2 = 0.5 * jnp.sum(-x2 * m2f) / jnp.sum(m2f)
    assert jnp.allclose(out2, ref2, rtol=1e-5, atol=1e-5), (out2, ref2)

    print("KERNEL_OK")
</pallas_src>

<mosaic_0001>
module attributes {stable_mosaic.version = 11 : i64} {
  func.func @_darkloss_kernel(%arg0: i32, %arg1: i32, %arg2: memref<16x128xf32, #tpu.memory_space<vmem>>, %arg3: memref<16x128xbf16, #tpu.memory_space<vmem>>, %arg4: memref<8x128xf32, #tpu.memory_space<vmem>>, %arg5: memref<8x128xf32, #tpu.memory_space<vmem>>, %arg6: memref<8x128xf32, #tpu.memory_space<vmem>>) attributes {dimension_semantics = [#tpu.dimension_semantics<parallel>, #tpu.dimension_semantics<arbitrary>], iteration_bounds = array<i64: 2, 1>, scalar_prefetch = 0 : i64, scratch_operands = 2 : i64, tpu.core_type = #tpu.core_type<tc>, window_params = [{transform_indices = @transform_0, window_bounds = array<i64: 16, 128>}, {transform_indices = @transform_1, window_bounds = array<i64: 16, 128>}, {transform_indices = @transform_2, window_bounds = array<i64: 8, 128>}]} {
    %c0_i32 = arith.constant 0 : i32
    %0 = arith.cmpi eq, %arg1, %c0_i32 : i32
    %1 = arith.extui %0 : i1 to i32
    %c0_i32_0 = arith.constant 0 : i32
    %2 = arith.cmpi ne, %1, %c0_i32_0 : i32
    scf.if %2 {
      %cst = arith.constant 0.000000e+00 : f32
      %11 = vector.broadcast %cst : f32 to vector<8x128xf32>
      %c0 = arith.constant 0 : index
      %c0_5 = arith.constant 0 : index
      %12 = vector.load %arg5[%c0, %c0_5] : memref<8x128xf32, #tpu.memory_space<vmem>>, vector<8x128xf32>
      tpu.vector_store %arg5[%c0, %c0_5], %11 {strides = array<i32>} : memref<8x128xf32, #tpu.memory_space<vmem>>, vector<8x128xf32>,
      %cst_6 = arith.constant 0.000000e+00 : f32
      %13 = vector.broadcast %cst_6 : f32 to vector<8x128xf32>
      %c0_7 = arith.constant 0 : index
      %c0_8 = arith.constant 0 : index
      %14 = vector.load %arg6[%c0_7, %c0_8] : memref<8x128xf32, #tpu.memory_space<vmem>>, vector<8x128xf32>
      tpu.vector_store %arg6[%c0_7, %c0_8], %13 {strides = array<i32>} : memref<8x128xf32, #tpu.memory_space<vmem>>, vector<8x128xf32>,
    } else {
    }
    %c1_i32 = arith.constant 1 : i32
    %3 = arith.muli %arg0, %c1_i32 : i32
    %4 = arith.addi %3, %arg1 : i32
    %c1_i32_1 = arith.constant 1 : i32
    %5 = arith.cmpi slt, %4, %c1_i32_1 : i32
    %6 = arith.extui %5 : i1 to i32
    %c0_i32_2 = arith.constant 0 : i32
    %7 = arith.cmpi ne, %6, %c0_i32_2 : i32
    scf.if %7 {
      %c0 = arith.constant 0 : index
      %c0_5 = arith.constant 0 : index
      %11 = vector.load %arg2[%c0, %c0_5] : memref<16x128xf32, #tpu.memory_space<vmem>>, vector<16x128xf32>
      %c0_6 = arith.constant 0 : index
      %c0_7 = arith.constant 0 : index
      %12 = vector.load %arg3[%c0_6, %c0_7] : memref<16x128xbf16, #tpu.memory_space<vmem>>, vector<16x128xbf16>
      %13 = arith.extf %12 : vector<16x128xbf16> to vector<16x128xf32>
      %14 = arith.mulf %11, %13 : vector<16x128xf32>
      %c0_8 = arith.constant 0 : index
      %c0_9 = arith.constant 0 : index
      %15 = vector.load %arg5[%c0_8, %c0_9] : memref<8x128xf32, #tpu.memory_space<vmem>>, vector<8x128xf32>
      %16 = vector.shape_cast %14 : vector<16x128xf32> to vector<2x8x128xf32>
      %cst = arith.constant dense<0.000000e+00> : vector<8x128xf32>
      %17 = vector.multi_reduction <add>, %16, %cst [0] : vector<2x8x128xf32> to vector<8x128xf32>
      %18 = arith.addf %15, %17 : vector<8x128xf32>
      %c0_10 = arith.constant 0 : index
      %c0_11 = arith.constant 0 : index
      %19 = vector.load %arg5[%c0_10, %c0_11] : memref<8x128xf32, #tpu.memory_space<vmem>>, vector<8x128xf32>
      tpu.vector_store %arg5[%c0_10, %c0_11], %18 {strides = array<i32>} : memref<8x128xf32, #tpu.memory_space<vmem>>, vector<8x128xf32>,
      %c0_12 = arith.constant 0 : index
      %c0_13 = arith.constant 0 : index
      %20 = vector.load %arg6[%c0_12, %c0_13] : memref<8x128xf32, #tpu.memory_space<vmem>>, vector<8x128xf32>
      %21 = vector.shape_cast %13 : vector<16x128xf32> to vector<2x8x128xf32>
      %cst_14 = arith.constant dense<0.000000e+00> : vector<8x128xf32>
      %22 = vector.multi_reduction <add>, %21, %cst_14 [0] : vector<2x8x128xf32> to vector<8x128xf32>
      %23 = arith.addf %20, %22 : vector<8x128xf32>
      %c0_15 = arith.constant 0 : index
      %c0_16 = arith.constant 0 : index
      %24 = vector.load %arg6[%c0_15, %c0_16] : memref<8x128xf32, #tpu.memory_space<vmem>>, vector<8x128xf32>
      tpu.vector_store %arg6[%c0_15, %c0_16], %23 {strides = array<i32>} : memref<8x128xf32, #tpu.memory_space<vmem>>, vector<8x128xf32>,
    } else {
    }
    %c0_i32_3 = arith.constant 0 : i32
    %8 = arith.cmpi eq, %arg1, %c0_i32_3 : i32
    %9 = arith.extui %8 : i1 to i32
    %c0_i32_4 = arith.constant 0 : i32
    %10 = arith.cmpi ne, %9, %c0_i32_4 : i32
    scf.if %10 {
      %c0 = arith.constant 0 : index
      %c0_5 = arith.constant 0 : index
      %11 = vector.load %arg5[%c0, %c0_5] : memref<8x128xf32, #tpu.memory_space<vmem>>, vector<8x128xf32>
      %12 = vector.shape_cast %11 : vector<8x128xf32> to vector<1x8x128xf32>
      %cst = arith.constant dense<0.000000e+00> : vector<1xf32>
      %13 = vector.multi_reduction <add>, %12, %cst [1, 2] : vector<1x8x128xf32> to vector<1xf32>
      %14 = vector.shape_cast %13 : vector<1xf32> to vector<1x1x1xf32>
      %15 = vector.extract %14[0, 0, 0] : f32 from vector<1x1x1xf32>
      %cst_6 = arith.constant 0.000000e+00 : f32
      %16 = arith.subf %cst_6, %15 : f32
      %c0_7 = arith.constant 0 : index
      %c0_8 = arith.constant 0 : index
      %17 = vector.load %arg6[%c0_7, %c0_8] : memref<8x128xf32, #tpu.memory_space<vmem>>, vector<8x128xf32>
      %18 = vector.shape_cast %17 : vector<8x128xf32> to vector<1x8x128xf32>
      %cst_9 = arith.constant dense<0.000000e+00> : vector<1xf32>
      %19 = vector.multi_reduction <add>, %18, %cst_9 [1, 2] : vector<1x8x128xf32> to vector<1xf32>
      %20 = vector.shape_cast %19 : vector<1xf32> to vector<1x1x1xf32>
      %21 = vector.extract %20[0, 0, 0] : f32 from vector<1x1x1xf32>
      %22 = tpu.iota {dimensions = array<i32: 0>} : vector<8x128xi32>
      %c0_i32_10 = arith.constant 0 : i32
      %23 = vector.broadcast %c0_i32_10 : i32 to vector<8x128xi32>
      %24 = arith.cmpi eq, %22, %23 : vector<8x128xi32>
      %c1_i32_11 = arith.constant 1 : i32
      %25 = vector.broadcast %c1_i32_11 : i32 to vector<8x128xi32>
      %26 = arith.cmpi eq, %22, %25 : vector<8x128xi32>
      %cst_12 = arith.constant 0.000000e+00 : f32
      %27 = vector.broadcast %21 : f32 to vector<8x128xf32>
      %28 = vector.broadcast %cst_12 : f32 to vector<8x128xf32>
      %29 = arith.select %26, %27, %28 : vector<8x128xi1>, vector<8x128xf32>
      %30 = vector.broadcast %16 : f32 to vector<8x128xf32>
      %31 = arith.select %24, %30, %29 : vector<8x128xi1>, vector<8x128xf32>
      %c0_13 = arith.constant 0 : index
      %c0_14 = arith.constant 0 : index
      %32 = vector.load %arg4[%c0_13, %c0_14] : memref<8x128xf32, #tpu.memory_space<vmem>>, vector<8x128xf32>
      tpu.vector_store %arg4[%c0_13, %c0_14], %31 {strides = array<i32>} : memref<8x128xf32, #tpu.memory_space<vmem>>, vector<8x128xf32>,
    } else {
    }
    return
  }
  func.func @transform_0(%arg0: i32, %arg1: i32) -> (i32, i32) {
    %c1_i32 = arith.constant 1 : i32
    %0 = arith.muli %arg0, %c1_i32 : i32
    %1 = arith.addi %0, %arg1 : i32
    %c0_i32 = arith.constant 0 : i32
    %2 = arith.minsi %1, %c0_i32 : i32
    %c0_i32_0 = arith.constant 0 : i32
    %c0_i32_1 = arith.constant 0 : i32
    return %2, %c0_i32_0 : i32, i32
  }
  func.func @transform_1(%arg0: i32, %arg1: i32) -> (i32, i32) {
    %c1_i32 = arith.constant 1 : i32
    %0 = arith.muli %arg0, %c1_i32 : i32
    %1 = arith.addi %0, %arg1 : i32
    %c0_i32 = arith.constant 0 : i32
    %2 = arith.minsi %1, %c0_i32 : i32
    %c0_i32_0 = arith.constant 0 : i32
    %c0_i32_1 = arith.constant 0 : i32
    return %2, %c0_i32_0 : i32, i32
  }
  func.func @transform_2(%arg0: i32, %arg1: i32) -> (i32, i32) {
    %c0_i32 = arith.constant 0 : i32
    %c0_i32_0 = arith.constant 0 : i32
    return %arg0, %c0_i32 : i32, i32
  }
}

</mosaic_0001>

<bundles_post_ra>
// kernel: tpu_custom_call.1
= control target key start
LH: loop header
LB: loop body
LE: loop exit
PB: predicated region body
PF: predicated region fallthrough
CT: control target
= control target key end

     0   :  { %7 = vsyncpa [#allocation5], 0  ;;  %s941_s0 = inlined_call_operand.hbm [shape: f32[16,128], index: 0, kind: input, shape index: {}]   ;;  %s942_s1 = inlined_call_operand.hbm [shape: bf16[16,128], index: 1, kind: input, shape index: {}]   ;;  %s943_s2 = inlined_call_operand.hbm [shape: f32[16,128], index: 2, kind: output, shape index: {}]  }
   0x1   :  { %9 = vsyncpa [#allocation5 + $0x1], 0 }
   0x2   :  { %10 = vsyncpa [#allocation8], 0 }
   0x3   :  { %12 = vsyncpa [#allocation8 + $0x1], 0 }
   0x4   :  { %13 = vsyncpa [#allocation6], 0 }
   0x5   :  { %15 = vsyncpa [#allocation6 + $0x1], 0  ;;  %s732_s9 = smov 0   ;;  %s734_s10 = smov 0  }
   0x6   :  { %s736_s11 = smov 0   ;;  %s738_s12 = smov 0  }
   0x7   :  { %s740_s13 = smov 0   ;;  %s742_s14 = smov 0  }
   0x8   :  { %s744_s15 = smov 0   ;;  %s746_s16 = smov 0  }
   0x9 LB: > { %s415_s17 = sadd.s32 4294967295, %s707_s16   ;;  %s416_s18 = sadd.s32 4294967294, %s707_s16   ;;  %s707_s16 = sphi %s746_s16, %s21_s16   ;;  %s703_s15 = sphi %s744_s15, %s962_s15   ;;  %s699_s14 = sphi %s742_s14, %s961_s14   ;;  %s695_s13 = sphi %s740_s13, %s931_s13   ;;  %s691_s12 = sphi %s738_s12, %s960_s12   ;;  %s687_s11 = sphi %s736_s11, %s959_s11   ;;  %s683_s10 = sphi %s734_s10, %s958_s10   ;;  %s679_s9 = sphi %s732_s9, %s957_s9  }
   0xa   : > { %s33_s19 = sadd.s32 1, %s703_s15  ;;  %p676_p1 = scmp.ne.s32.totalorder %s695_s13, 0 }
   0xb   : > { %p35_p0 = scmp.ge.s32.totalorder %s33_s19, 2  ;;  %p54_p2 = scmp.eq.s32.totalorder %s707_s16, 0 }
   0xc   : > { %p59_p3 = scmp.ne.s32.totalorder %s695_s13, %s691_s12  ;;  %p60_p5 = scmp.eq.s32.totalorder %s415_s17, 0 }
   0xd   : > { %s964_s19 = smov (%p35_p0, %s33_s19), 0  ;;  %p778_p4 = por %p676_p1, %p54_p2 }
   0xe   : > { %p782_p6 = por %p60_p5, %p59_p3  ;;  %s101_s22 = ssub.s32 %s703_s15, %s964_s19 }
   0xf   : > { %p102_p7 = scmp.eq.s32.totalorder %s101_s22, 0  ;;  %s104_s23 = sadd.s32 1, %s687_s11 }
  0x10   : > { %s947_s21 = scalar_select %p782_p6, 1, 0 }
  0x11   : > { %s790_s24 = scalar_select %p102_p7, %s687_s11, %s104_s23  }
  0x12   : > { %p114_p8 = scmp.ne.s32.totalorder %s687_s11, %s683_s10  ;;  %p115_p9 = scmp.eq.s32.totalorder %s415_s17, 1 }
  0x13   : > { %p120_p10 = scmp.ne.s32.totalorder %s683_s10, %s679_s9  ;;  %p121_p11 = scmp.eq.s32.totalorder %s416_s18, 1 }
  0x14   : > { %p796_p12 = por %p115_p9, %p114_p8  ;;  %p461_p1 = scmp.lt.s32.totalorder %s707_s16, 2 }
  0x15   : > { %p801_p0 = por %p121_p11, %p120_p10  ;;  %s709_s27 = smov [#allocation4]  }
  0x16   : > { %s948_s25 = scalar_select %p796_p12, 1, 0 }
  0x17   : > { %s949_s26 = scalar_select %p801_p0, 1, 0 }
  0x18   : > { %s155_s28 = sshll.u32 %s709_s27, 4  ;;  %p808_p2 = pnand %p461_p1, %p778_p4  ;;  %s156_s28 = int_to_ptr.vmem [resolvable:$true] %s155_s28 }
  0x19   : > { %s540_s4 = scalar_lea.hbm %s941_s0, 256 }
  0x1a   : > { %p541_p3 = scmp.ne.s32.totalorder %s941_s0, %s540_s4  ;;  %p542_p5 = pneg %p808_p2 }
  0x1b   : > { %p547_p8 = scmp.lt.u32.totalorder %s540_s4, %s540_s4  ;;  %p549_p9 = scmp.lt.u32.totalorder %s540_s4, %s941_s0 }
  0x1c   : > { %p543_p7 = pnand %p542_p5, %p541_p3 }
  0x1d   : > { %p550_p10 = por %p549_p9, %p547_p8 }
  0x1e   : > { %p544_p4 = pneg %p543_p7 }
  0x20   : > { %p551_p11 = pnand %p550_p10, %p544_p4 }
  0x22   : > { %554 = shalt.err (!%p551_p11)
}
  0x23   : > { %s555_s12 = scalar_lea.vmem %s156_s28, 256  ;;  %s562_s17 = scalar_lea.vmem %s156_s28, 512 }
  0x24   : > { %p556_p1 = scmp.ne.s32.totalorder %s156_s28, %s555_s12  ;;  %p563_p12 = scmp.lt.s32.totalorder %s156_s28, %s156_s28 }
  0x25   : > { %p564_p6 = scmp.lt.s32.totalorder %s562_s17, %s555_s12 }
  0x26   : > { %p558_p13 = pnand %p556_p1, %p542_p5 }
  0x27   : > { %p565_p3 = por %p564_p6, %p563_p12 }
  0x28   : > { %p559_p0 = pneg %p558_p13 }
  0x2a   : > { %p566_p7 = pnand %p565_p3, %p559_p0 }
  0x2c   : > { %569 = shalt.err (!%p566_p7)
}
  0x2d   : > { %s710_s18 = smov 128   ;;  %s711_s20 = smov 8  }
  0x2e   : > { %453 = dma.hbm_to_vmem [thread:$0]  (!%p808_p2), %s941_s0, 256, %s156_s28, [#allocation5], %s710_s18, %s710_s18, %s711_s20  }
  0x2f   : > { %p425_p4 = scmp.ge.s32.totalorder %s707_s16, 1  ;;  %p187_p8 = scmp.lt.s32.totalorder %s707_s16, 3 }
  0x30   : > { %s712_s30 = smov [#allocation7]   ;;  %s570_s6 = scalar_lea.hbm %s942_s1, 128 }
  0x31   : > { %p836_p13 = pnand %p425_p4, %p187_p8  ;;  %s179_s3 = sshll.u32 %s712_s30, 4  ;;  %s180_s3 = int_to_ptr.vmem [resolvable:$true] %s179_s3 }
  0x32   : > { %p571_p6 = scmp.ne.s32.totalorder %s942_s1, %s570_s6  ;;  %p577_p9 = scmp.lt.u32.totalorder %s570_s6, %s570_s6 }
  0x33   : > { %s951_s27 = scalar_select %p836_p13, 1, 0 }
  0x34   : > { %p573_p12 = pnand %p571_p6, %p542_p5  ;;  %p579_p10 = scmp.lt.u32.totalorder %s570_s6, %s942_s1 }
  0x36   : > { %p574_p0 = pneg %p573_p12  ;;  %p580_p11 = por %p579_p10, %p577_p9 }
  0x38   : > { %p581_p1 = pnand %p580_p11, %p574_p0 }
  0x3a   : > { %584 = shalt.err (!%p581_p1)
}
  0x3b   : > { %s585_s17 = scalar_lea.vmem %s180_s3, 128  ;;  %s592_s18 = scalar_lea.vmem %s180_s3, 256 }
  0x3c   : > { %p586_p3 = scmp.ne.s32.totalorder %s180_s3, %s585_s17  ;;  %p593_p8 = scmp.lt.s32.totalorder %s180_s3, %s180_s3 }
  0x3d   : > { %p594_p13 = scmp.lt.s32.totalorder %s592_s18, %s585_s17 }
  0x3e   : > { %p588_p7 = pnand %p586_p3, %p542_p5 }
  0x3f   : > { %p595_p6 = por %p594_p13, %p593_p8 }
  0x40   : > { %p589_p4 = pneg %p588_p7 }
  0x42   : > { %p596_p12 = pnand %p595_p6, %p589_p4 }
  0x44   : > { %599 = shalt.err (!%p596_p12)
}
  0x45   : > { %s713_s20 = smov 64   ;;  %s714_s22 = smov 4  }
  0x46   : > { %456 = dma.hbm_to_vmem [thread:$0]  (!%p808_p2), %s942_s1, 128, %s180_s3, [#allocation8], %s713_s20, %s713_s20, %s714_s22  }
  0x47   : > { %p952_p0 = scmp.ne.s32.totalorder %s951_s27, 0 }
  0x48   : > { %s193_s4 = sand.u32 (!%p952_p0), 1, %s695_s13   ;;  %p953_p5 = scmp.ne.s32.totalorder (!%p952_p0), %s947_s21, 0 }
  0x49   : > { %191 = sbr.rel (%p952_p0) target bundleno = 328 (0x148), region = 28  ;;  %s426_s5 = sshll.u32 (!%p952_p0), %s193_s4, 4 }
  0x4a   : > { %s194_s6 = scalar_lea.sflag (!%p952_p0), [#allocation5], %s193_s4  ;;  %s197_s7 = scalar_lea.vmem (!%p952_p0), [#allocation4], %s426_s5 }
  0x50   : > { %665 = dma.done.wait (%p953_p5), %s194_s6, 256  }
  0x51   : > { %667 = vsyncadd (%p953_p5), %s194_s6, 4294967040  ;;  %s427_s29 = sshll.u32 %s193_s4, 3  ;;  %s203_s8 = scalar_lea.sflag [#allocation8], %s193_s4 }
  0x52   : > { %s206_s28 = scalar_lea.vmem [#allocation7], %s427_s29 }
  0x53   : > { %669 = dma.done.wait (%p953_p5), %s203_s8, 128  }
  0x54   : > { %671 = vsyncadd (%p953_p5), %s203_s8, 4294967168  ;;  %s229_s27 = sand.u32 1, %s683_s10   ;;  %v715_v0 = vmov 0.0   ;;  %p429_p2 = scmp.ge.s32.totalorder %s699_s14, 1 }
  0x55   : > { %s874_s3 = sshll.u32 %s229_s27, 3  ;;  %244 = vst [vmem:[#allocation2] sm:$0xff] %v715_v0  ;;  %245 = vst [vmem:[#allocation3] sm:$0xff] %v715_v0  ;;  %v251_v1 = vld [vmem:[%s197_s7] sm:$0xff] (!%p429_p2)  ;;  %v252_v2 = vld [vmem:[%s197_s7 + $0x8] sm:$0xff] (!%p429_p2) }
  0x56   : > { %s231_s12 = scalar_lea.vmem [#allocation9], %s874_s3  ;;  %250 = sbr.rel (%p429_p2) target bundleno = 96 (0x60), region = 44  ;;  %v437_v3 = vld [vmem:[%s206_s28] sm:$0xff] (!%p429_p2)  }
  0x57   : > { %v438_v4 = vunpack.c.l.bf16 (!%p429_p2), %v437_v3  ;;  %v439_v5 = vunpack.c.h.bf16 (!%p429_p2), %v437_v3 }
  0x59   : > { %v257_v7 = vmul.f32 (!%p429_p2), %v438_v4, %v251_v1  ;;  %v258_v8 = vmul.f32 (!%p429_p2), %v439_v5, %v252_v2  ;;  %v264_v9 = vadd.f32 (!%p429_p2), %v439_v5, %v438_v4 }
  0x5b   : > { %v260_v11 = vadd.f32 (!%p429_p2), %v258_v8, %v257_v7 }
  0x5c   : > { %v263_v6 = vld [vmem:[#allocation3] sm:$0xff] (!%p429_p2)  ;;  %v259_v10 = vld [vmem:[#allocation2] sm:$0xff] (!%p429_p2) }
  0x5d   : > { %v265_v12 = vadd.f32 %v264_v9, %v263_v6  ;;  %v261_v13 = vadd.f32 %v260_v11, %v259_v10 }
  0x5f   : > { %266 = vst [vmem:[#allocation3] sm:$0xff] %v265_v12  ;;  %262 = vst [vmem:[#allocation2] sm:$0xff] %v261_v13 }
  0x60 PF: > { %v291_v30 = vlaneseq  ;;  %s431_s18 = sshll.u32 %s699_s14, 7  ;;  %s314_s20 = sshll.u32 %s231_s12, 4  ;;  %s886_s20 = int_to_ptr.vmem [resolvable:$true] %s314_s20 }
  0x61   : > { %s884_s4 = scalar_lea.hbm %s943_s2, %s431_s18  ;;  %s301_s14 = scalar_lea.sflag [#allocation6], %s229_s27 }
  0x62   : > { %v292_v31 = vshrl.u32 %v291_v30, 7  ;;  %s600_s5 = scalar_lea.vmem %s886_s20, 128  ;;  %p954_p9 = scmp.ne.s32.totalorder %s948_s25, 0 }
  0x63   : > { %p601_p13 = scmp.ne.s32.totalorder %s886_s20, %s600_s5  ;;  %s716_s6 = smov [#allocation9]  }
  0x64   : > { %vm294_vm0 = vcmp.eq.s32.totalorder %v292_v31, 1  ;;  %vm293_vm1 = vcmp.eq.s32.totalorder %v292_v31, 0  ;;  %s604_s7 = sshll.u32 %s716_s6, 4  ;;  %s605_s7 = int_to_ptr.vmem [resolvable:$false] %s604_s7 }
  0x65   : > { %p602_p10 = pnand %p601_p13, %p954_p9  ;;  %s606_s29 = scalar_lea.vmem %s605_s7, 256 }
  0x66   : > { %v270_v14 = vld [vmem:[#allocation2] sm:$0xff]  ;;  %v281_v15 = vld [vmem:[#allocation3] sm:$0xff]  ;;  %p607_p1 = scmp.lt.s32.totalorder %s886_s20, %s605_s7  ;;  %p608_p3 = scmp.lt.s32.totalorder %s606_s29, %s600_s5 }
  0x67   : > { %271 = vadd.xlane.f32.xlu0 %v270_v14  ;;  %p603_p11 = pneg %p602_p10 }
  0x68   : > { %p609_p7 = por %p608_p3, %p607_p1 }
  0x6a   : > { %p610_p4 = pnand %p609_p7, %p603_p11 }
  0x6b   : > { %282 = vadd.xlane.f32.xlu0 %v281_v15 }
  0xf4   : > { %v272_v16 = vpop.xlane.xlu0 %271 }
  0xf5   : > { %v273_v17 = vrot.slane %v272_v16, 4 }
  0xf7   : > { %v274_v18 = vadd.f32 %v273_v17, %v272_v16 }
  0xf8   : > { %v283_v19 = vpop.xlane.xlu0 %282 }
  0xf9   : > { %v275_v20 = vrot.slane %v274_v18, 2  ;;  %v284_v21 = vrot.slane %v283_v19, 4 }
  0xfb   : > { %v285_v22 = vadd.f32 %v284_v21, %v283_v19  ;;  %v276_v23 = vadd.f32 %v275_v20, %v274_v18 }
  0xfd   : > { %v286_v24 = vrot.slane %v285_v22, 2  ;;  %v277_v25 = vrot.slane %v276_v23, 1 }
  0xff   : > { %v287_v26 = vadd.f32 %v286_v24, %v285_v22  ;;  %v278_v27 = vadd.f32 %v277_v25, %v276_v23 }
 0x101   : > { %440 = vpush %v278_v27  ;;  %v288_v28 = vrot.slane %v287_v26, 1 }
 0x103   : > { %v289_v29 = vadd.f32 %v288_v28, %v287_v26 }
 0x105   : > { %442 = vpush %v289_v29 }
 0x132   : > { %s441_s21 = spop %440 }
 0x133   : > { %s280_s17 = ssub.f32 0.0, %s441_s21 }
 0x135   : > { %v297_v33 = vstv %s280_s17 }
 0x136   : > { %s443_s22 = spop %442 }
 0x137   : > { %v295_v32 = vstv %s443_s22 }
 0x138   : > { %v296_v34 = vsel %vm294_vm0, %v295_v32, 0.0 }
 0x139   : > { %v298_v35 = vsel %vm293_vm1, %v297_v33, %v296_v34 }
 0x13a   : > { %299 = vst [vmem:[%s231_s12] sm:$0xff] %v298_v35 }
 0x13b   : > { %613 = shalt.err (!%p610_p4)
}
 0x13c   : > { %s614_s8 = scalar_lea.hbm %s884_s4, 128  ;;  %s618_s3 = scalar_lea.hbm %s943_s2, 256 }
 0x13d   : > { %p615_p8 = scmp.ne.s32.totalorder %s884_s4, %s614_s8  ;;  %p619_p0 = scmp.lt.u32.totalorder %s884_s4, %s943_s2 }
 0x13e   : > { %p620_p5 = scmp.lt.u32.totalorder %s618_s3, %s614_s8  ;;  %p622_p13 = scmp.lt.u32.totalorder %s614_s8, %s884_s4 }
 0x13f   : > { %p616_p6 = pnand %p615_p8, %p954_p9 }
 0x140   : > { %p621_p2 = por %p620_p5, %p619_p0 }
 0x141   : > { %p617_p12 = pneg %p616_p6 }
 0x142   : > { %p623_p10 = por %p622_p13, %p621_p2 }
 0x144   : > { %p624_p11 = pnand %p623_p10, %p617_p12 }
 0x146   : > { %627 = shalt.err (!%p624_p11)
}
 0x147   : > { %448 = dma.vmem_to_hbm [thread:$0]  (%p954_p9), %s886_s20, 128, %s884_s4, %s301_s14  }
 0x148 PF: > { %s326_s17 = sand.u32 1, %s679_s9   ;;  %p955_p1 = scmp.ne.s32.totalorder %s949_s26, 0 }
 0x149   : > { %p956_p3 = scmp.ge.s32.totalorder %s707_s16, 2  ;;  %s327_s18 = scalar_lea.sflag [#allocation6], %s326_s17 }
 0x14b   : > { %p458_p7 = pnand %p956_p3, %p955_p1 }
 0x14d   : > { %673 = dma.done.wait (!%p458_p7), %s327_s18, 128  }
 0x14e   : > { %675 = vsyncadd (!%p458_p7), %s327_s18, 4294967168  ;;  %s21_s16 = sadd.s32 1, %s707_s16   ;;  %s957_s9 = smov %s683_s10 }
 0x14f   : > { %p18_p4 = scmp.ge.s32.totalorder %s21_s16, 4   ;;  %s958_s10 = smov %s687_s11 }
 0x150   : > { %s959_s11 = smov %s790_s24  ;;  %s960_s12 = smov %s695_s13 }
 0x151   : > { %s931_s13 = smov 0   ;;  %s961_s14 = smov %s703_s15 }
 0x152   : > { %s962_s15 = smov %s964_s19  ;;  %20 = sbr.rel (!%p18_p4) target bundleno = 9 (0x9), region = 98 }
 0x159   :  { %332 = vsyncpa [#allocation5], 1 }
 0x15a   :  { %334 = vsyncpa [#allocation5 + $0x1], 1 }
 0x15b   :  { %335 = vsyncpa [#allocation8], 1 }
 0x15c   :  { %337 = vsyncpa [#allocation8 + $0x1], 1 }
 0x15d   :  { %338 = vsyncpa [#allocation6], 1 }
 0x15e   :  { %340 = vsyncpa [#allocation6 + $0x1], 1 }

</bundles_post_ra>
